<compile_context>
chip_gen: v7x
topology: tpu7x:2x2x1
jax: 0.10.0
libtpu: 0.0.40
codegen_flags: <defaults>
</compile_context>

<pallas_src>
import functools

import jax
import jax.numpy as jnp
from jax.experimental import pallas as pl
from jax.experimental.pallas import tpu as pltpu


# ----------------------------------------------------------------------------- kernel
def _rmsnorm_kernel(x_ref, g_ref, o_ref, *, eps):
    # x_ref: (TR, D) tile of rows; g_ref: (1, D) gain; o_ref: (TR, D)
    xf = x_ref[...].astype(jnp.float32)
    ms = jnp.mean(xf * xf, axis=-1, keepdims=True)        # XLU cross-lane reduce
    inv_rms = jax.lax.rsqrt(ms + eps)                     # EUP, not VALU divide
    g = g_ref[...].astype(jnp.float32)
    # Re-read + re-cast x for the scaling/store pass so the fp32 copy of the
    # tile does not have to stay live across the reduction (halves the fp32
    # intermediate footprint for bf16 tiles; recompute is free under DMA bound).
    o_ref[...] = (x_ref[...].astype(jnp.float32) * inv_rms * g).astype(o_ref.dtype)


# ----------------------------------------------------------------------------- wrapper
def _round_down_multiple(x, m):
    return max((x // m) * m, m)


def rmsnorm(x, gain, *, eps=1e-5, tile_bytes=4 << 20):
    """RMSNorm over the last axis of `x`; gain has shape (d_model,).

    `tile_bytes` ~= bytes of x moved per grid step (2-8 MiB is the sweet spot
    for all of v5e/v6e/v7x on this memory-bound kernel).
    """
    orig_shape = x.shape
    d_model = orig_shape[-1]
    assert gain.shape == (d_model,)
    # Invariant (perf, not correctness): d_model should be a multiple of 128 so
    # output stores are unmasked lane-dense `vst`; other sizes still work.

    xf = x.reshape(-1, d_model)
    n_rows = xf.shape[0]

    dtype_bytes = jnp.dtype(x.dtype).itemsize
    row_mult = 16 if dtype_bytes < 4 else 8        # bf16 packs 2 rows / sublane
    row_bytes = d_model * dtype_bytes

    # Byte-budget tile: ~tile_bytes of input per grid step.
    tile_rows = _round_down_multiple(max(tile_bytes // row_bytes, row_mult), row_mult)

    # Prefer >= ~8 grid steps (pipeline depth + v7x 2-TC sharding) as long as
    # that keeps at least ~1 MiB of input per step.
    min_tile_rows = _round_down_multiple(max((1 << 20) // row_bytes, row_mult), row_mult)
    rows_for_8_steps = _round_down_multiple(max(pl.cdiv(n_rows, 8), row_mult), row_mult)
    if rows_for_8_steps >= min_tile_rows:
        tile_rows = min(tile_rows, rows_for_8_steps)

    if tile_rows >= n_rows:
        # Single block covering the whole (flattened) row axis — block dim equals
        # the full array dim, so no (8,128) divisibility concern.
        tile_rows = n_rows
        grid = (1,)
    else:
        # Non-divisible last block is fine without padding: Pallas masks the
        # out-of-bounds writes and every row normalizes independently.
        grid = (pl.cdiv(n_rows, tile_rows),)

    # VMEM budget: in + out double-buffered (~4x tile) + fp32 intermediates,
    # plus headroom; cap below v7x's 64 MiB physical VMEM.
    tile_in_bytes = tile_rows * row_bytes
    vmem_limit = int(min(max(6 * tile_in_bytes + (8 << 20), 32 << 20), 48 << 20))

    g2d = gain.reshape(1, d_model)

    out = pl.pallas_call(
        functools.partial(_rmsnorm_kernel, eps=eps),
        out_shape=jax.ShapeDtypeStruct(xf.shape, x.dtype),
        grid=grid,
        in_specs=[
            pl.BlockSpec((tile_rows, d_model), lambda i: (i, 0)),   # x tile
            pl.BlockSpec((1, d_model), lambda i: (0, 0)),           # gain (resident)
        ],
        out_specs=pl.BlockSpec((tile_rows, d_model), lambda i: (i, 0)),
        compiler_params=pltpu.CompilerParams(
            dimension_semantics=("parallel",),
            vmem_limit_bytes=vmem_limit,
        ),
    )(xf, g2d)

    return out.reshape(orig_shape)


# ----------------------------------------------------------------------------- reference
def rmsnorm_ref(x, gain, eps=1e-5):
    xf = x.astype(jnp.float32)
    ms = jnp.mean(xf * xf, axis=-1, keepdims=True)
    return (xf / jnp.sqrt(ms + eps) * gain.astype(jnp.float32)).astype(x.dtype)


# ----------------------------------------------------------------------------- main
if __name__ == "__main__":
    key = jax.random.PRNGKey(0)
    k1, k2, k3 = jax.random.split(key, 3)

    d_model = 256                       # lane-dense (multiple of 128)
    eps = 1e-5
    gain = 1.0 + 0.1 * jax.random.normal(k3, (d_model,), jnp.float32)

    # Case 1: small fp32 input (single-block grid).
    x_small = jax.random.normal(k1, (2, 8, d_model), jnp.float32)
    y_small = jax.block_until_ready(rmsnorm(x_small, gain, eps=eps))
    ref_small = rmsnorm_ref(x_small, gain, eps=eps)
    assert y_small.shape == x_small.shape and y_small.dtype == x_small.dtype
    assert bool(jnp.all(jnp.isfinite(y_small)))
    assert bool(jnp.max(jnp.abs(y_small - ref_small)) < 1e-5)

    # Case 2: bf16 input, row count not a multiple of the tile, multi-step grid
    # (small tile_bytes forces several steps + a masked partial last block),
    # fp32 math inside the kernel with cast back to bf16.
    x_bf16 = jax.random.normal(k2, (2, 200, d_model), jnp.float32).astype(jnp.bfloat16)
    y_bf16 = jax.block_until_ready(rmsnorm(x_bf16, gain, eps=eps, tile_bytes=64 << 10))
    ref_bf16 = rmsnorm_ref(x_bf16, gain, eps=eps)
    assert y_bf16.shape == x_bf16.shape and y_bf16.dtype == jnp.bfloat16
    err = jnp.max(jnp.abs(y_bf16.astype(jnp.float32) - ref_bf16.astype(jnp.float32)))
    assert bool(err < 2e-2)

    # Case 3: same bf16 input through the default byte-budget path (single
    # large block here since the demo tensor is tiny) — must agree too.
    y_bf16_def = jax.block_until_ready(rmsnorm(x_bf16, gain, eps=eps))
    err2 = jnp.max(jnp.abs(y_bf16_def.astype(jnp.float32) - ref_bf16.astype(jnp.float32)))
    assert bool(err2 < 2e-2)

    print("KERNEL_OK")
</pallas_src>

<mosaic_0001>
module attributes {stable_mosaic.version = 11 : i64} {
  func.func @_rmsnorm_kernel(%arg0: i32, %arg1: memref<16x256xf32, #tpu.memory_space<vmem>>, %arg2: memref<1x256xf32, #tpu.memory_space<vmem>>, %arg3: memref<16x256xf32, #tpu.memory_space<vmem>>) attributes {dimension_semantics = [#tpu.dimension_semantics<parallel>], iteration_bounds = array<i64: 1>, scalar_prefetch = 0 : i64, scratch_operands = 0 : i64, tpu.core_type = #tpu.core_type<tc>, window_params = [{transform_indices = @transform_0, window_bounds = array<i64: 16, 256>}, {pipeline_mode = #tpu.pipeline_mode<synchronous>, transform_indices = @transform_1, window_bounds = array<i64: 1, 256>}, {transform_indices = @transform_2, window_bounds = array<i64: 16, 256>}]} {
    %c0 = arith.constant 0 : index
    %c0_0 = arith.constant 0 : index
    %0 = vector.load %arg1[%c0, %c0_0] : memref<16x256xf32, #tpu.memory_space<vmem>>, vector<16x256xf32>
    %1 = arith.mulf %0, %0 : vector<16x256xf32>
    %cst = arith.constant dense<0.000000e+00> : vector<16xf32>
    %2 = vector.multi_reduction <add>, %1, %cst [1] : vector<16x256xf32> to vector<16xf32>
    %3 = vector.shape_cast %2 : vector<16xf32> to vector<16x1xf32>
    %cst_1 = arith.constant 2.560000e+02 : f32
    %4 = vector.broadcast %cst_1 : f32 to vector<16x1xf32>
    %5 = arith.divf %3, %4 : vector<16x1xf32>
    %cst_2 = arith.constant 9.99999974E-6 : f32
    %6 = vector.broadcast %cst_2 : f32 to vector<16x1xf32>
    %7 = arith.addf %5, %6 : vector<16x1xf32>
    %8 = math.rsqrt %7 : vector<16x1xf32>
    %c0_3 = arith.constant 0 : index
    %c0_4 = arith.constant 0 : index
    %9 = vector.load %arg2[%c0_3, %c0_4] : memref<1x256xf32, #tpu.memory_space<vmem>>, vector<1x256xf32>
    %c0_5 = arith.constant 0 : index
    %c0_6 = arith.constant 0 : index
    %10 = vector.load %arg1[%c0_5, %c0_6] : memref<16x256xf32, #tpu.memory_space<vmem>>, vector<16x256xf32>
    %11 = vector.broadcast %8 : vector<16x1xf32> to vector<16x256xf32>
    %12 = arith.mulf %10, %11 : vector<16x256xf32>
    %13 = vector.broadcast %9 : vector<1x256xf32> to vector<16x256xf32>
    %14 = arith.mulf %12, %13 : vector<16x256xf32>
    %c0_7 = arith.constant 0 : index
    %c0_8 = arith.constant 0 : index
    %15 = vector.load %arg3[%c0_7, %c0_8] : memref<16x256xf32, #tpu.memory_space<vmem>>, vector<16x256xf32>
    tpu.vector_store %arg3[%c0_7, %c0_8], %14 {strides = array<i32>} : memref<16x256xf32, #tpu.memory_space<vmem>>, vector<16x256xf32>,
    return
  }
  func.func @transform_0(%arg0: i32) -> (i32, i32) {
    %c0_i32 = arith.constant 0 : i32
    %c0_i32_0 = arith.constant 0 : i32
    return %arg0, %c0_i32 : i32, i32
  }
  func.func @transform_1(%arg0: i32) -> (i32, i32) {
    %c0_i32 = arith.constant 0 : i32
    %c0_i32_0 = arith.constant 0 : i32
    %c0_i32_1 = arith.constant 0 : i32
    return %c0_i32, %c0_i32_0 : i32, i32
  }
  func.func @transform_2(%arg0: i32) -> (i32, i32) {
    %c0_i32 = arith.constant 0 : i32
    %c0_i32_0 = arith.constant 0 : i32
    return %arg0, %c0_i32 : i32, i32
  }
}

</mosaic_0001>

<bundles_post_ra>
// kernel: tpu_custom_call.1
= control target key start
LH: loop header
LB: loop body
LE: loop exit
PB: predicated region body
PF: predicated region fallthrough
CT: control target
= control target key end

     0   :  { %7 = vsyncpa [#allocation3], 0  ;;  %s196_s0 = inlined_call_operand.hbm [shape: f32[16,256], index: 0, kind: input, shape index: {}]   ;;  %s197_s1 = inlined_call_operand.vmem [shape: f32[1,256], index: 1, kind: input, shape index: {}]   ;;  %s198_s2 = inlined_call_operand.hbm [shape: f32[16,256], index: 2, kind: output, shape index: {}]  }
   0x1   :  { %8 = vsyncpa [#allocation4], 0  ;;  %s144_s9 = smov [#allocation2]   ;;  %s96_s13 = scalar_lea.hbm %s196_s0, 512 }
   0x2   :  { %s14_s10 = sshll.u32 %s144_s9, 4  ;;  %p97_p0 = scmp.ne.s32.totalorder %s196_s0, %s96_s13  ;;  %s15_s10 = int_to_ptr.vmem [resolvable:$true] %s14_s10 }
   0x3   :  { %p100_p1 = scmp.lt.u32.totalorder %s96_s13, %s196_s0 }
   0x5   :  { %p102_p2 = pnand %p100_p1, %p97_p0 }
   0x7   :  { %105 = shalt.err (!%p102_p2)
}
   0x8   :  { %s106_s18 = scalar_lea.vmem %s15_s10, 512  ;;  %p111_p4 = scmp.lt.s32.totalorder %s15_s10, %s15_s10 }
   0x9   :  { %p107_p3 = scmp.ne.s32.totalorder %s15_s10, %s106_s18  ;;  %p112_p5 = scmp.lt.s32.totalorder %s106_s18, %s106_s18 }
   0xb   :  { %p113_p6 = por %p112_p5, %p111_p4 }
   0xd   :  { %p114_p7 = pnand %p113_p6, %p107_p3 }
   0xf   :  { %117 = shalt.err (!%p114_p7)
}
  0x10   :  { %s145_s19 = smov 256   ;;  %s146_s20 = smov 16  }
  0x11   :  { %20 = dma.hbm_to_vmem [thread:$0]  %s196_s0, 512, %s15_s10, [#allocation3], %s145_s19, %s145_s19, %s146_s20  }
  0x12   :  { %140 = dma.done.wait [#allocation3], 512  }
  0x13   :  { %141 = vsyncadd [#allocation3], 4294966784  ;;  %v26_v0 = vld [vmem:[#allocation2] sm:$0xff]  ;;  %v27_v1 = vld [vmem:[#allocation2 + $0x8] sm:$0xff]  ;;  %v53_v12 = vlaneseq  ;;  %s147_s24 = smov [#allocation5]  }
  0x14   :  { %v28_v2 = vld [vmem:[#allocation2 + $0x10] sm:$0xff]  ;;  %v30_v3 = vmul.f32 %v26_v0, %v26_v0  ;;  %v31_v4 = vmul.f32 %v27_v1, %v27_v1  ;;  %v29_v5 = vld [vmem:[#allocation2 + $0x18] sm:$0xff]  ;;  %v47_v20 = vld [vmem:[%s197_s1] sm:$0x3]  ;;  %s76_s25 = sshll.u32 %s147_s24, 4  ;;  %s77_s25 = int_to_ptr.vmem [resolvable:$true] %s76_s25 }
  0x15   :  { %v32_v6 = vmul.f32 %v28_v2, %v28_v2  ;;  %v33_v7 = vmul.f32 %v29_v5, %v29_v5  ;;  %v54_v16 = vshrl.u32 %v53_v12, 7  ;;  %s118_s1 = scalar_lea.vmem %s77_s25, 512  ;;  %p123_p9 = scmp.lt.s32.totalorder %s77_s25, %s77_s25 }
  0x16   :  { %v34_v8 = vadd.f32 %v31_v4, %v30_v3  ;;  %p119_p8 = scmp.ne.s32.totalorder %s77_s25, %s118_s1  ;;  %p124_p10 = scmp.lt.s32.totalorder %s118_s1, %s118_s1 }
  0x17   :  { %v37_v9 = vadd.f32 %v33_v7, %v32_v6  ;;  %v55_v18 = vsub.s32 0, %v54_v16  ;;  %v59_v19 = vsub.s32 1, %v54_v16 }
  0x18   :  { %35 = vadd.xlane.f32.xlu0 %v34_v8  ;;  %p125_p11 = por %p124_p10, %p123_p9 }
  0x19   :  { %v56_v21 = vrot.slane %v47_v20, %v55_v18  ;;  %v60_v22 = vrot.slane %v47_v20, %v59_v19 }
  0x1a   :  { %p126_p12 = pnand %p125_p11, %p119_p8 }
  0x1c   :  { %38 = vadd.xlane.f32.xlu0 %v37_v9 }
  0xa5   :  { %v36_v10 = vpop.xlane.xlu0 %35 }
  0xa6   :  { %v41_v11 = vmul.f32 0.00390625, %v36_v10 }
  0xa8   :  { %v43_v13 = vadd.f32 1e-05, %v41_v11 }
  0xa9   :  { %v39_v14 = vpop.xlane.xlu0 %38 }
  0xaa   :  { %92 = vrsqrt.f32 %v43_v13  ;;  %v42_v15 = vmul.f32 0.00390625, %v39_v14 }
  0xac   :  { %v44_v17 = vadd.f32 1e-05, %v42_v15 }
  0xae   :  { %94 = vrsqrt.f32 %v44_v17 }
  0xb4   :  { %v93_v23 = vpop.eup %92 }
  0xb5   :  { %v48_v24 = vmul.f32 %v93_v23, %v26_v0  ;;  %v49_v25 = vmul.f32 %v93_v23, %v27_v1 }
  0xb7   :  { %v63_v26 = vmul.f32 %v56_v21, %v48_v24  ;;  %v64_v27 = vmul.f32 %v60_v22, %v49_v25 }
  0xb8   :  { %v95_v28 = vpop.eup %94 }
  0xb9   :  { %v50_v29 = vmul.f32 %v95_v28, %v28_v2  ;;  %v51_v30 = vmul.f32 %v95_v28, %v29_v5  ;;  %67 = vst [vmem:[#allocation5] sm:$0xff] %v63_v26  ;;  %68 = vst [vmem:[#allocation5 + $0x8] sm:$0xff] %v64_v27 }
  0xbb   :  { %v65_v31 = vmul.f32 %v56_v21, %v50_v29  ;;  %v66_v32 = vmul.f32 %v60_v22, %v51_v30 }
  0xbd   :  { %69 = vst [vmem:[#allocation5 + $0x10] sm:$0xff] %v65_v31  ;;  %70 = vst [vmem:[#allocation5 + $0x18] sm:$0xff] %v66_v32 }
  0xbe   :  { %129 = shalt.err (!%p126_p12)
}
  0xbf   :  { %s130_s28 = scalar_lea.hbm %s198_s2, 512 }
  0xc0   :  { %p131_p13 = scmp.ne.s32.totalorder %s198_s2, %s130_s28  ;;  %p134_p0 = scmp.lt.u32.totalorder %s130_s28, %s198_s2 }
  0xc2   :  { %p136_p1 = pnand %p134_p0, %p131_p13 }
  0xc4   :  { %139 = shalt.err (!%p136_p1)
}
  0xc5   :  { %82 = dma.vmem_to_hbm [thread:$0]  %s77_s25, 512, %s198_s2, [#allocation4], %s145_s19, %s145_s19, %s146_s20  }
  0xc6   :  { %142 = dma.done.wait [#allocation4], 512  }
  0xc7   :  { %143 = vsyncadd [#allocation4], 4294966784 }
  0xc8   :  { %86 = vsyncpa [#allocation3], 1 }
  0xc9   :  { %87 = vsyncpa [#allocation4], 1 }

</bundles_post_ra>
